<compile_context>
chip_gen: v7x
topology: tpu7x:2x2x1
jax: 0.10.0
libtpu: 0.0.40
codegen_flags: <defaults>
</compile_context>

<pallas_src>
import jax
import jax.numpy as jnp
from jax import lax
from jax.experimental import pallas as pl
from jax.experimental.pallas import tpu as pltpu

# Small, module-consistent shapes: seq len L, batch B, embedding_dim E,
# hidden_dim H (4H = 128 = one full lane tile), vocab size.
L, B, E, H, VOCAB = 8, 2, 16, 32, 50
VOCAB_PAD = ((VOCAB + 127) // 128) * 128   # pad gather-table rows to full lanes


def siamese_lstm_kernel(s_ref, p_ref, whh_ref, out_ref):
    """Fused embedding-gather + single-layer LSTM, last batch row only.

    s_ref   : (L, B)          int32  token ids (time-major)
    p_ref   : (VOCAB_PAD, 4H) f32    emb_table @ W_ih^T + (b_ih + b_hh)
                                     (zero-padded rows are never selected)
    whh_ref : (H, 4H)         f32    W_hh^T
    out_ref : (L, H)          f32    == v[:, -1, :] of the torch module
    PyTorch gate order: i, f, g, o.
    """
    # Token ids of the last batch element -> (L, 1).
    ids = s_ref[...][:, B - 1:B]

    # Fused embedding lookup + input projection + bias, hoisted out of the
    # recurrence: one (L, VOCAB_PAD) x (VOCAB_PAD, 4H) MXU matmul.  Bias is
    # already baked into every valid row of P, so no extra add is needed.
    vocab_iota = lax.broadcasted_iota(jnp.int32, (L, VOCAB_PAD), 1)
    onehot = (vocab_iota == ids).astype(jnp.float32)              # (L, VOCAB_PAD)
    z_in = jnp.dot(onehot, p_ref[...],
                   preferred_element_type=jnp.float32)            # (L, 4H)

    whh = whh_ref[...]                                            # (H, 4H)
    h = jnp.zeros((1, H), jnp.float32)
    c = jnp.zeros((1, H), jnp.float32)
    hs = []
    for t in range(L):  # static trip count -> fully unrolled recurrence
        z = z_in[t:t + 1, :] + jnp.dot(h, whh,
                                       preferred_element_type=jnp.float32)  # (1, 4H)
        sig = jax.nn.sigmoid(z)        # one full-width EUP op (covers i, f, o)
        th = jnp.tanh(z)               # one full-width EUP op (covers g)
        i_g = sig[:, 0 * H:1 * H]
        f_g = sig[:, 1 * H:2 * H]
        g_g = th[:, 2 * H:3 * H]
        o_g = sig[:, 3 * H:4 * H]
        c = f_g * c + i_g * g_g
        h = o_g * jnp.tanh(c)
        hs.append(h)
    # Single (L, H) store at the end (one write, no per-step partial stores).
    out_ref[...] = jnp.concatenate(hs, axis=0)


def prepare_params(emb_table, w_ih, w_hh, b_ih, b_hh):
    """One-time parameter prep (off the per-call path).

    Folds the embedding table, the input projection W_ih and BOTH biases into
    a single gather+project table P, and transposes W_hh once.
    """
    bias = (b_ih + b_hh).astype(jnp.float32)                      # (4H,)
    proj = (emb_table.astype(jnp.float32)
            @ w_ih.T.astype(jnp.float32)) + bias[None, :]         # (VOCAB, 4H)
    p = jnp.zeros((VOCAB_PAD, 4 * H), jnp.float32).at[:VOCAB].set(proj)
    whh_t = w_hh.T.astype(jnp.float32)                            # (H, 4H)
    return p, whh_t


def siamese_forward(s, p, whh_t):
    """Reproduces SiameseNet.forward(s) -> v[:, -1, :], shape (L, H)."""
    return pl.pallas_call(
        siamese_lstm_kernel,
        out_shape=jax.ShapeDtypeStruct((L, H), jnp.float32),
        in_specs=[pl.BlockSpec(memory_space=pltpu.MemorySpace.VMEM)] * 3,
        out_specs=pl.BlockSpec(memory_space=pltpu.MemorySpace.VMEM),
    )(s, p, whh_t)


def _reference_forward(s, emb_table, w_ih, w_hh, b_ih, b_hh):
    """Pure-JAX reference (same math as torch.nn.LSTM forward)."""
    emb = emb_table[s].astype(jnp.float32)                        # (L, B, E)
    bias = b_ih + b_hh

    def cell(carry, x_t):
        h, c = carry
        z = x_t @ w_ih.T + h @ w_hh.T + bias
        i_g = jax.nn.sigmoid(z[:, 0 * H:1 * H])
        f_g = jax.nn.sigmoid(z[:, 1 * H:2 * H])
        g_g = jnp.tanh(z[:, 2 * H:3 * H])
        o_g = jax.nn.sigmoid(z[:, 3 * H:4 * H])
        c_new = f_g * c + i_g * g_g
        h_new = o_g * jnp.tanh(c_new)
        return (h_new, c_new), h_new

    init = (jnp.zeros((B, H), jnp.float32), jnp.zeros((B, H), jnp.float32))
    _, v = lax.scan(cell, init, emb)                              # (L, B, H)
    return v[:, -1, :]


if __name__ == "__main__":
    key = jax.random.PRNGKey(0)
    k1, k2, k3, k4, k5, k6 = jax.random.split(key, 6)

    s = jax.random.randint(k1, (L, B), 0, VOCAB, dtype=jnp.int32)
    emb_table = 0.1 * jax.random.normal(k2, (VOCAB, E), jnp.float32)
    w_ih = 0.1 * jax.random.normal(k3, (4 * H, E), jnp.float32)
    w_hh = 0.1 * jax.random.normal(k4, (4 * H, H), jnp.float32)
    b_ih = 0.1 * jax.random.normal(k5, (4 * H,), jnp.float32)
    b_hh = 0.1 * jax.random.normal(k6, (4 * H,), jnp.float32)

    # One-time parameter preparation (equivalent to module weight loading).
    p, whh_t = prepare_params(emb_table, w_ih, w_hh, b_ih, b_hh)
    p, whh_t = jax.block_until_ready((p, whh_t))

    out = siamese_forward(s, p, whh_t)
    jax.block_until_ready(out)

    ref = _reference_forward(s, emb_table, w_ih, w_hh, b_ih, b_hh)
    assert out.shape == (L, H)
    assert jnp.allclose(out, ref, atol=1e-4, rtol=1e-4)

    print("KERNEL_OK")
</pallas_src>

<mosaic_0001>
module attributes {stable_mosaic.version = 11 : i64} {
  func.func @siamese_lstm_kernel(%arg0: memref<8x2xi32, #tpu.memory_space<vmem>>, %arg1: memref<128x128xf32, #tpu.memory_space<vmem>>, %arg2: memref<32x128xf32, #tpu.memory_space<vmem>>, %arg3: memref<8x32xf32, #tpu.memory_space<vmem>>) attributes {dimension_semantics = [], scalar_prefetch = 0 : i64, scratch_operands = 0 : i64, tpu.core_type = #tpu.core_type<tc>} {
    %c0 = arith.constant 0 : index
    %c0_0 = arith.constant 0 : index
    %0 = vector.load %arg0[%c0, %c0_0] : memref<8x2xi32, #tpu.memory_space<vmem>>, vector<8x2xi32>
    %1 = vector.extract_strided_slice %0 {offsets = [0, 1], sizes = [8, 1], strides = [1, 1]} : vector<8x2xi32> to vector<8x1xi32>
    %2 = tpu.iota {dimensions = array<i32: 1>} : vector<8x128xi32>
    %3 = vector.broadcast %1 : vector<8x1xi32> to vector<8x128xi32>
    %4 = arith.cmpi eq, %2, %3 : vector<8x128xi32>
    %5 = arith.extui %4 : vector<8x128xi1> to vector<8x128xi32>
    %6 = arith.sitofp %5 : vector<8x128xi32> to vector<8x128xf32>
    %c0_1 = arith.constant 0 : index
    %c0_2 = arith.constant 0 : index
    %7 = vector.load %arg1[%c0_1, %c0_2] : memref<128x128xf32, #tpu.memory_space<vmem>>, vector<128x128xf32>
    %cst = arith.constant dense<0.000000e+00> : vector<8x128xf32>
    %8 = tpu.matmul %6, %7, %cst {dimension_numbers = #tpu.dot_dimension_numbers<[1], [0], [0], [1], [0, 0, 1, 1], [], []>} : vector<8x128xf32>, vector<128x128xf32>, vector<8x128xf32> -> vector<8x128xf32>
    %c0_3 = arith.constant 0 : index
    %c0_4 = arith.constant 0 : index
    %9 = vector.load %arg2[%c0_3, %c0_4] : memref<32x128xf32, #tpu.memory_space<vmem>>, vector<32x128xf32>
    %cst_5 = arith.constant 0.000000e+00 : f32
    %10 = vector.broadcast %cst_5 : f32 to vector<1x32xf32>
    %cst_6 = arith.constant 0.000000e+00 : f32
    %11 = vector.broadcast %cst_6 : f32 to vector<1x32xf32>
    %12 = vector.extract_strided_slice %8 {offsets = [0, 0], sizes = [1, 128], strides = [1, 1]} : vector<8x128xf32> to vector<1x128xf32>
    %cst_7 = arith.constant dense<0.000000e+00> : vector<1x128xf32>
    %13 = tpu.matmul %10, %9, %cst_7 {dimension_numbers = #tpu.dot_dimension_numbers<[1], [0], [0], [1], [0, 0, 1, 1], [], []>} : vector<1x32xf32>, vector<32x128xf32>, vector<1x128xf32> -> vector<1x128xf32>
    %14 = arith.addf %12, %13 : vector<1x128xf32>
    %15 = arith.negf %14 : vector<1x128xf32>
    %16 = math.exp %15 : vector<1x128xf32>
    %cst_8 = arith.constant 1.000000e+00 : f32
    %17 = vector.broadcast %cst_8 : f32 to vector<1x128xf32>
    %18 = arith.addf %17, %16 : vector<1x128xf32>
    %19 = arith.divf %17, %18 : vector<1x128xf32>
    %20 = math.tanh %14 : vector<1x128xf32>
    %21 = vector.extract_strided_slice %19 {offsets = [0, 0], sizes = [1, 32], strides = [1, 1]} : vector<1x128xf32> to vector<1x32xf32>
    %22 = vector.extract_strided_slice %19 {offsets = [0, 32], sizes = [1, 32], strides = [1, 1]} : vector<1x128xf32> to vector<1x32xf32>
    %23 = vector.extract_strided_slice %20 {offsets = [0, 64], sizes = [1, 32], strides = [1, 1]} : vector<1x128xf32> to vector<1x32xf32>
    %24 = vector.extract_strided_slice %19 {offsets = [0, 96], sizes = [1, 32], strides = [1, 1]} : vector<1x128xf32> to vector<1x32xf32>
    %25 = arith.mulf %22, %11 : vector<1x32xf32>
    %26 = arith.mulf %21, %23 : vector<1x32xf32>
    %27 = arith.addf %25, %26 : vector<1x32xf32>
    %28 = math.tanh %27 : vector<1x32xf32>
    %29 = arith.mulf %24, %28 : vector<1x32xf32>
    %30 = vector.extract_strided_slice %8 {offsets = [1, 0], sizes = [1, 128], strides = [1, 1]} : vector<8x128xf32> to vector<1x128xf32>
    %cst_9 = arith.constant dense<0.000000e+00> : vector<1x128xf32>
    %31 = tpu.matmul %29, %9, %cst_9 {dimension_numbers = #tpu.dot_dimension_numbers<[1], [0], [0], [1], [0, 0, 1, 1], [], []>} : vector<1x32xf32>, vector<32x128xf32>, vector<1x128xf32> -> vector<1x128xf32>
    %32 = arith.addf %30, %31 : vector<1x128xf32>
    %33 = arith.negf %32 : vector<1x128xf32>
    %34 = math.exp %33 : vector<1x128xf32>
    %cst_10 = arith.constant 1.000000e+00 : f32
    %35 = vector.broadcast %cst_10 : f32 to vector<1x128xf32>
    %36 = arith.addf %35, %34 : vector<1x128xf32>
    %37 = arith.divf %35, %36 : vector<1x128xf32>
    %38 = math.tanh %32 : vector<1x128xf32>
    %39 = vector.extract_strided_slice %37 {offsets = [0, 0], sizes = [1, 32], strides = [1, 1]} : vector<1x128xf32> to vector<1x32xf32>
    %40 = vector.extract_strided_slice %37 {offsets = [0, 32], sizes = [1, 32], strides = [1, 1]} : vector<1x128xf32> to vector<1x32xf32>
    %41 = vector.extract_strided_slice %38 {offsets = [0, 64], sizes = [1, 32], strides = [1, 1]} : vector<1x128xf32> to vector<1x32xf32>
    %42 = vector.extract_strided_slice %37 {offsets = [0, 96], sizes = [1, 32], strides = [1, 1]} : vector<1x128xf32> to vector<1x32xf32>
    %43 = arith.mulf %40, %27 : vector<1x32xf32>
    %44 = arith.mulf %39, %41 : vector<1x32xf32>
    %45 = arith.addf %43, %44 : vector<1x32xf32>
    %46 = math.tanh %45 : vector<1x32xf32>
    %47 = arith.mulf %42, %46 : vector<1x32xf32>
    %48 = vector.extract_strided_slice %8 {offsets = [2, 0], sizes = [1, 128], strides = [1, 1]} : vector<8x128xf32> to vector<1x128xf32>
    %cst_11 = arith.constant dense<0.000000e+00> : vector<1x128xf32>
    %49 = tpu.matmul %47, %9, %cst_11 {dimension_numbers = #tpu.dot_dimension_numbers<[1], [0], [0], [1], [0, 0, 1, 1], [], []>} : vector<1x32xf32>, vector<32x128xf32>, vector<1x128xf32> -> vector<1x128xf32>
    %50 = arith.addf %48, %49 : vector<1x128xf32>
    %51 = arith.negf %50 : vector<1x128xf32>
    %52 = math.exp %51 : vector<1x128xf32>
    %cst_12 = arith.constant 1.000000e+00 : f32
    %53 = vector.broadcast %cst_12 : f32 to vector<1x128xf32>
    %54 = arith.addf %53, %52 : vector<1x128xf32>
    %55 = arith.divf %53, %54 : vector<1x128xf32>
    %56 = math.tanh %50 : vector<1x128xf32>
    %57 = vector.extract_strided_slice %55 {offsets = [0, 0], sizes = [1, 32], strides = [1, 1]} : vector<1x128xf32> to vector<1x32xf32>
    %58 = vector.extract_strided_slice %55 {offsets = [0, 32], sizes = [1, 32], strides = [1, 1]} : vector<1x128xf32> to vector<1x32xf32>
    %59 = vector.extract_strided_slice %56 {offsets = [0, 64], sizes = [1, 32], strides = [1, 1]} : vector<1x128xf32> to vector<1x32xf32>
    %60 = vector.extract_strided_slice %55 {offsets = [0, 96], sizes = [1, 32], strides = [1, 1]} : vector<1x128xf32> to vector<1x32xf32>
    %61 = arith.mulf %58, %45 : vector<1x32xf32>
    %62 = arith.mulf %57, %59 : vector<1x32xf32>
    %63 = arith.addf %61, %62 : vector<1x32xf32>
    %64 = math.tanh %63 : vector<1x32xf32>
    %65 = arith.mulf %60, %64 : vector<1x32xf32>
    %66 = vector.extract_strided_slice %8 {offsets = [3, 0], sizes = [1, 128], strides = [1, 1]} : vector<8x128xf32> to vector<1x128xf32>
    %cst_13 = arith.constant dense<0.000000e+00> : vector<1x128xf32>
    %67 = tpu.matmul %65, %9, %cst_13 {dimension_numbers = #tpu.dot_dimension_numbers<[1], [0], [0], [1], [0, 0, 1, 1], [], []>} : vector<1x32xf32>, vector<32x128xf32>, vector<1x128xf32> -> vector<1x128xf32>
    %68 = arith.addf %66, %67 : vector<1x128xf32>
    %69 = arith.negf %68 : vector<1x128xf32>
    %70 = math.exp %69 : vector<1x128xf32>
    %cst_14 = arith.constant 1.000000e+00 : f32
    %71 = vector.broadcast %cst_14 : f32 to vector<1x128xf32>
    %72 = arith.addf %71, %70 : vector<1x128xf32>
    %73 = arith.divf %71, %72 : vector<1x128xf32>
    %74 = math.tanh %68 : vector<1x128xf32>
    %75 = vector.extract_strided_slice %73 {offsets = [0, 0], sizes = [1, 32], strides = [1, 1]} : vector<1x128xf32> to vector<1x32xf32>
    %76 = vector.extract_strided_slice %73 {offsets = [0, 32], sizes = [1, 32], strides = [1, 1]} : vector<1x128xf32> to vector<1x32xf32>
    %77 = vector.extract_strided_slice %74 {offsets = [0, 64], sizes = [1, 32], strides = [1, 1]} : vector<1x128xf32> to vector<1x32xf32>
    %78 = vector.extract_strided_slice %73 {offsets = [0, 96], sizes = [1, 32], strides = [1, 1]} : vector<1x128xf32> to vector<1x32xf32>
    %79 = arith.mulf %76, %63 : vector<1x32xf32>
    %80 = arith.mulf %75, %77 : vector<1x32xf32>
    %81 = arith.addf %79, %80 : vector<1x32xf32>
    %82 = math.tanh %81 : vector<1x32xf32>
    %83 = arith.mulf %78, %82 : vector<1x32xf32>
    %84 = vector.extract_strided_slice %8 {offsets = [4, 0], sizes = [1, 128], strides = [1, 1]} : vector<8x128xf32> to vector<1x128xf32>
    %cst_15 = arith.constant dense<0.000000e+00> : vector<1x128xf32>
    %85 = tpu.matmul %83, %9, %cst_15 {dimension_numbers = #tpu.dot_dimension_numbers<[1], [0], [0], [1], [0, 0, 1, 1], [], []>} : vector<1x32xf32>, vector<32x128xf32>, vector<1x128xf32> -> vector<1x128xf32>
    %86 = arith.addf %84, %85 : vector<1x128xf32>
    %87 = arith.negf %86 : vector<1x128xf32>
    %88 = math.exp %87 : vector<1x128xf32>
    %cst_16 = arith.constant 1.000000e+00 : f32
    %89 = vector.broadcast %cst_16 : f32 to vector<1x128xf32>
    %90 = arith.addf %89, %88 : vector<1x128xf32>
    %91 = arith.divf %89, %90 : vector<1x128xf32>
    %92 = math.tanh %86 : vector<1x128xf32>
    %93 = vector.extract_strided_slice %91 {offsets = [0, 0], sizes = [1, 32], strides = [1, 1]} : vector<1x128xf32> to vector<1x32xf32>
    %94 = vector.extract_strided_slice %91 {offsets = [0, 32], sizes = [1, 32], strides = [1, 1]} : vector<1x128xf32> to vector<1x32xf32>
    %95 = vector.extract_strided_slice %92 {offsets = [0, 64], sizes = [1, 32], strides = [1, 1]} : vector<1x128xf32> to vector<1x32xf32>
    %96 = vector.extract_strided_slice %91 {offsets = [0, 96], sizes = [1, 32], strides = [1, 1]} : vector<1x128xf32> to vector<1x32xf32>
    %97 = arith.mulf %94, %81 : vector<1x32xf32>
    %98 = arith.mulf %93, %95 : vector<1x32xf32>
    %99 = arith.addf %97, %98 : vector<1x32xf32>
    %100 = math.tanh %99 : vector<1x32xf32>
    %101 = arith.mulf %96, %100 : vector<1x32xf32>
    %102 = vector.extract_strided_slice %8 {offsets = [5, 0], sizes = [1, 128], strides = [1, 1]} : vector<8x128xf32> to vector<1x128xf32>
    %cst_17 = arith.constant dense<0.000000e+00> : vector<1x128xf32>
    %103 = tpu.matmul %101, %9, %cst_17 {dimension_numbers = #tpu.dot_dimension_numbers<[1], [0], [0], [1], [0, 0, 1, 1], [], []>} : vector<1x32xf32>, vector<32x128xf32>, vector<1x128xf32> -> vector<1x128xf32>
    %104 = arith.addf %102, %103 : vector<1x128xf32>
    %105 = arith.negf %104 : vector<1x128xf32>
    %106 = math.exp %105 : vector<1x128xf32>
    %cst_18 = arith.constant 1.000000e+00 : f32
    %107 = vector.broadcast %cst_18 : f32 to vector<1x128xf32>
    %108 = arith.addf %107, %106 : vector<1x128xf32>
    %109 = arith.divf %107, %108 : vector<1x128xf32>
    %110 = math.tanh %104 : vector<1x128xf32>
    %111 = vector.extract_strided_slice %109 {offsets = [0, 0], sizes = [1, 32], strides = [1, 1]} : vector<1x128xf32> to vector<1x32xf32>
    %112 = vector.extract_strided_slice %109 {offsets = [0, 32], sizes = [1, 32], strides = [1, 1]} : vector<1x128xf32> to vector<1x32xf32>
    %113 = vector.extract_strided_slice %110 {offsets = [0, 64], sizes = [1, 32], strides = [1, 1]} : vector<1x128xf32> to vector<1x32xf32>
    %114 = vector.extract_strided_slice %109 {offsets = [0, 96], sizes = [1, 32], strides = [1, 1]} : vector<1x128xf32> to vector<1x32xf32>
    %115 = arith.mulf %112, %99 : vector<1x32xf32>
    %116 = arith.mulf %111, %113 : vector<1x32xf32>
    %117 = arith.addf %115, %116 : vector<1x32xf32>
    %118 = math.tanh %117 : vector<1x32xf32>
    %119 = arith.mulf %114, %118 : vector<1x32xf32>
    %120 = vector.extract_strided_slice %8 {offsets = [6, 0], sizes = [1, 128], strides = [1, 1]} : vector<8x128xf32> to vector<1x128xf32>
    %cst_19 = arith.constant dense<0.000000e+00> : vector<1x128xf32>
    %121 = tpu.matmul %119, %9, %cst_19 {dimension_numbers = #tpu.dot_dimension_numbers<[1], [0], [0], [1], [0, 0, 1, 1], [], []>} : vector<1x32xf32>, vector<32x128xf32>, vector<1x128xf32> -> vector<1x128xf32>
    %122 = arith.addf %120, %121 : vector<1x128xf32>
    %123 = arith.negf %122 : vector<1x128xf32>
    %124 = math.exp %123 : vector<1x128xf32>
    %cst_20 = arith.constant 1.000000e+00 : f32
    %125 = vector.broadcast %cst_20 : f32 to vector<1x128xf32>
    %126 = arith.addf %125, %124 : vector<1x128xf32>
    %127 = arith.divf %125, %126 : vector<1x128xf32>
    %128 = math.tanh %122 : vector<1x128xf32>
    %129 = vector.extract_strided_slice %127 {offsets = [0, 0], sizes = [1, 32], strides = [1, 1]} : vector<1x128xf32> to vector<1x32xf32>
    %130 = vector.extract_strided_slice %127 {offsets = [0, 32], sizes = [1, 32], strides = [1, 1]} : vector<1x128xf32> to vector<1x32xf32>
    %131 = vector.extract_strided_slice %128 {offsets = [0, 64], sizes = [1, 32], strides = [1, 1]} : vector<1x128xf32> to vector<1x32xf32>
    %132 = vector.extract_strided_slice %127 {offsets = [0, 96], sizes = [1, 32], strides = [1, 1]} : vector<1x128xf32> to vector<1x32xf32>
    %133 = arith.mulf %130, %117 : vector<1x32xf32>
    %134 = arith.mulf %129, %131 : vector<1x32xf32>
    %135 = arith.addf %133, %134 : vector<1x32xf32>
    %136 = math.tanh %135 : vector<1x32xf32>
    %137 = arith.mulf %132, %136 : vector<1x32xf32>
    %138 = vector.extract_strided_slice %8 {offsets = [7, 0], sizes = [1, 128], strides = [1, 1]} : vector<8x128xf32> to vector<1x128xf32>
    %cst_21 = arith.constant dense<0.000000e+00> : vector<1x128xf32>
    %139 = tpu.matmul %137, %9, %cst_21 {dimension_numbers = #tpu.dot_dimension_numbers<[1], [0], [0], [1], [0, 0, 1, 1], [], []>} : vector<1x32xf32>, vector<32x128xf32>, vector<1x128xf32> -> vector<1x128xf32>
    %140 = arith.addf %138, %139 : vector<1x128xf32>
    %141 = arith.negf %140 : vector<1x128xf32>
    %142 = math.exp %141 : vector<1x128xf32>
    %cst_22 = arith.constant 1.000000e+00 : f32
    %143 = vector.broadcast %cst_22 : f32 to vector<1x128xf32>
    %144 = arith.addf %143, %142 : vector<1x128xf32>
    %145 = arith.divf %143, %144 : vector<1x128xf32>
    %146 = math.tanh %140 : vector<1x128xf32>
    %147 = vector.extract_strided_slice %145 {offsets = [0, 0], sizes = [1, 32], strides = [1, 1]} : vector<1x128xf32> to vector<1x32xf32>
    %148 = vector.extract_strided_slice %145 {offsets = [0, 32], sizes = [1, 32], strides = [1, 1]} : vector<1x128xf32> to vector<1x32xf32>
    %149 = vector.extract_strided_slice %146 {offsets = [0, 64], sizes = [1, 32], strides = [1, 1]} : vector<1x128xf32> to vector<1x32xf32>
    %150 = vector.extract_strided_slice %145 {offsets = [0, 96], sizes = [1, 32], strides = [1, 1]} : vector<1x128xf32> to vector<1x32xf32>
    %151 = arith.mulf %148, %135 : vector<1x32xf32>
    %152 = arith.mulf %147, %149 : vector<1x32xf32>
    %153 = arith.addf %151, %152 : vector<1x32xf32>
    %154 = math.tanh %153 : vector<1x32xf32>
    %155 = arith.mulf %150, %154 : vector<1x32xf32>
    %156 = tpu.concatenate %29, %47, %65, %83, %101, %119, %137, %155 in 0 : vector<1x32xf32>, vector<1x32xf32>, vector<1x32xf32>, vector<1x32xf32>, vector<1x32xf32>, vector<1x32xf32>, vector<1x32xf32>, vector<1x32xf32> -> vector<8x32xf32>
    %c0_23 = arith.constant 0 : index
    %c0_24 = arith.constant 0 : index
    %157 = vector.load %arg3[%c0_23, %c0_24] : memref<8x32xf32, #tpu.memory_space<vmem>>, vector<8x32xf32>
    tpu.vector_store %arg3[%c0_23, %c0_24], %156 {strides = array<i32>} : memref<8x32xf32, #tpu.memory_space<vmem>>, vector<8x32xf32>,
    return
  }
}

</mosaic_0001>

<bundles_post_ra>
// kernel: tpu_custom_call.1
= control target key start
LH: loop header
LB: loop body
LE: loop exit
PB: predicated region body
PF: predicated region fallthrough
CT: control target
= control target key end

     0   :  { %8 = vsyncpa [#allocation3], 0  ;;  %s1630_s0 = inlined_call_operand.vmem [shape: s32[8,2], index: 0, kind: input, shape index: {}]   ;;  %s1631_s1 = inlined_call_operand.hbm [shape: f32[128,128], index: 1, kind: input, shape index: {}]   ;;  %s1632_s2 = inlined_call_operand.hbm [shape: f32[32,128], index: 2, kind: input, shape index: {}]   ;;  %s1633_s3 = inlined_call_operand.hbm [shape: f32[8,32], index: 3, kind: output, shape index: {}]  }
   0x1   :  { %9 = vsyncpa [#allocation6], 0 }
   0x2   :  { %10 = vsyncpa [#allocation4], 0  ;;  %s1442_s12 = smov [#allocation2]   ;;  %s1370_s16 = scalar_lea.hbm %s1631_s1, 2048 }
   0x3   :  { %s18_s13 = sshll.u32 %s1442_s12, 4  ;;  %p1371_p0 = scmp.ne.s32.totalorder %s1631_s1, %s1370_s16  ;;  %s19_s13 = int_to_ptr.vmem [resolvable:$true] %s18_s13 }
   0x4   :  { %p1374_p1 = scmp.lt.u32.totalorder %s1370_s16, %s1631_s1 }
   0x6   :  { %p1376_p2 = pnand %p1374_p1, %p1371_p0 }
   0x8   :  { %1379 = shalt.err (!%p1376_p2)
}
   0x9   :  { %s1380_s21 = scalar_lea.vmem %s19_s13, 2048  ;;  %p1385_p4 = scmp.lt.s32.totalorder %s19_s13, %s19_s13 }
   0xa   :  { %p1381_p3 = scmp.ne.s32.totalorder %s19_s13, %s1380_s21  ;;  %p1386_p5 = scmp.lt.s32.totalorder %s1380_s21, %s1380_s21 }
   0xc   :  { %p1387_p6 = por %p1386_p5, %p1385_p4 }
   0xe   :  { %p1388_p7 = pnand %p1387_p6, %p1381_p3 }
  0x10   :  { %1391 = shalt.err (!%p1388_p7)
}
  0x11   :  { %s1443_s22 = smov 128   ;;  %s1444_s23 = smov 8  }
  0x12   :  { %24 = dma.hbm_to_vmem [thread:$0]  %s1631_s1, 2048, %s19_s13, [#allocation3], %s1443_s22, %s1443_s22, %s1444_s23  }
  0x13   :  { %s1445_s26 = smov [#allocation5]   ;;  %s1392_s30 = scalar_lea.hbm %s1632_s2, 512 }
  0x14   :  { %s30_s27 = sshll.u32 %s1445_s26, 4  ;;  %p1393_p8 = scmp.ne.s32.totalorder %s1632_s2, %s1392_s30  ;;  %s31_s27 = int_to_ptr.vmem [resolvable:$true] %s30_s27 }
  0x15   :  { %p1396_p9 = scmp.lt.u32.totalorder %s1392_s30, %s1632_s2 }
  0x17   :  { %p1398_p10 = pnand %p1396_p9, %p1393_p8 }
  0x19   :  { %1401 = shalt.err (!%p1398_p10)
}
  0x1a   :  { %s1402_s8 = scalar_lea.vmem %s31_s27, 512  ;;  %p1407_p12 = scmp.lt.s32.totalorder %s31_s27, %s31_s27 }
  0x1b   :  { %p1403_p11 = scmp.ne.s32.totalorder %s31_s27, %s1402_s8  ;;  %p1408_p13 = scmp.lt.s32.totalorder %s1402_s8, %s1402_s8 }
  0x1d   :  { %p1409_p0 = por %p1408_p13, %p1407_p12 }
  0x1f   :  { %p1410_p1 = pnand %p1409_p0, %p1403_p11 }
  0x21   :  { %1413 = shalt.err (!%p1410_p1)
}
  0x22   :  { %36 = dma.hbm_to_vmem [thread:$0]  %s1632_s2, 512, %s31_s27, [#allocation6], %s1443_s22, %s1443_s22, %s1444_s23  }
  0x23   :  { %1436 = dma.done.wait [#allocation3], 2048  }
  0x24   :  { %1437 = vsyncadd [#allocation3], 4294965248 }
  0x25   :  { %1438 = dma.done.wait [#allocation6], 512  }
  0x26   :  { %1439 = vsyncadd [#allocation6], 4294966784  ;;  %v1446_v0 = vmov 1   ;;  %v1447_v1 = vmov 0.0|0.0   ;;  %vm1448_vm0 = vmmov 0   ;;  %v1449_v2 = vmov 0.0  }
  0x27   :  { %1305 = vset.pattern.permute.xlu0 %v1446_v0  ;;  %1221 = vmatprep.subr.bf16.mxu0 %v1447_v1  ;;  %v43_v3 = vld [vmem:[%s1630_s0] sm:$0xff]  ;;  %v52_v4 = vld [vmem:[#allocation2] sm:$0xff]  ;;  %v53_v5 = vld [vmem:[#allocation2 + $0x8] sm:$0xff]  ;;  %v44_v34 = vlaneseq  ;;  %v1450_v37 = vmov 1.0   ;;  %s1451_s0 = smov 64   ;;  %s1452_s11 = smov 32  }
  0x28   :  { %1245 = vmatprep.subr.bf16.mxu1 %v1447_v1  ;;  %1141 = vmatprep.mubr.msk.f32.mxu1 %vm1448_vm0, %v1449_v2  ;;  %v1222_v6 = vpack.c.bf16 %v53_v5, %v52_v4  ;;  %v54_v7 = vld [vmem:[#allocation2 + $0x10] sm:$0xff]  ;;  %v55_v8 = vld [vmem:[#allocation2 + $0x18] sm:$0xff]  ;;  %v56_v10 = vld [vmem:[#allocation2 + $0x20] sm:$0xff]  ;;  %vm142_vm2 = vcmask 261120   ;;  %vm989_vm3 = vcmask 1040384   ;;  %vm991_vm4 = vcmask 1041408  }
  0x29   :  { %1130 = vmatprep.mubr.msk.f32.mxu0 %vm1448_vm0, %v1449_v2  ;;  %47 = vperm.xlu0 %1305, %v43_v3   ;;  %v1225_v9 = vpack.c.bf16 %v55_v8, %v54_v7  ;;  %v57_v11 = vld [vmem:[#allocation2 + $0x28] sm:$0xff]  ;;  %v138_v12 = vld [vmem:[#allocation5] sm:$0xff]  ;;  %v140_v15 = vld [vmem:[#allocation5 + $0x10] sm:$0xff]  ;;  %v45_v35 = vand.u32 127, %v44_v34  ;;  %vm993_vm5 = vcmask 1042432   ;;  %vm995_vm6 = vcmask 1043456  }
  0x2a   :  { %1223 = vmatpush3.bf16.msra.mxu0 %v1222_v6  ;;  %v139_v13 = vld [vmem:[#allocation5 + $0x8] sm:$0xff]  ;;  %v141_v16 = vld [vmem:[#allocation5 + $0x18] sm:$0xff]  ;;  %v1228_v17 = vpack.c.bf16 %v57_v11, %v56_v10  ;;  %v58_v19 = vld [vmem:[#allocation2 + $0x30] sm:$0xff]  ;;  %vm997_vm7 = vcmask 1044480   ;;  %vm999_vm8 = vcmask 1045504   ;;  %vm1001_vm9 = vcmask 1046528  }
  0x2b   :  { %1224 = vmatprep.subr.bf16.mxu0 %v1447_v1  ;;  %v1508_v14 = vpack.c.bf16 %v139_v13, %v138_v12  ;;  %v1511_v18 = vpack.c.bf16 %v141_v16, %v140_v15  ;;  %v59_v20 = vld [vmem:[#allocation2 + $0x38] sm:$0xff]  ;;  %v60_v22 = vld [vmem:[#allocation2 + $0x40] sm:$0xff]  ;;  %v61_v23 = vld [vmem:[#allocation2 + $0x48] sm:$0xff]  ;;  %s1453_s12 = smov [#allocation7]  }
  0x2c   :  { %v1231_v21 = vpack.c.bf16 %v59_v20, %v58_v19  ;;  %v1234_v24 = vpack.c.bf16 %v61_v23, %v60_v22  ;;  %v62_v25 = vld [vmem:[#allocation2 + $0x50] sm:$0xff]  ;;  %v63_v26 = vld [vmem:[#allocation2 + $0x58] sm:$0xff]  ;;  %v64_v28 = vld [vmem:[#allocation2 + $0x60] sm:$0xff]  ;;  %s1014_s13 = sshll.u32 %s1453_s12, 4  ;;  %s1015_s13 = int_to_ptr.vmem [resolvable:$true] %s1014_s13 }
  0x2d   :  { %1247 = vmatpush3.bf16.msra.mxu1 %v1508_v14  ;;  %v1237_v27 = vpack.c.bf16 %v63_v26, %v62_v25  ;;  %v65_v29 = vld [vmem:[#allocation2 + $0x68] sm:$0xff]  ;;  %v66_v31 = vld [vmem:[#allocation2 + $0x70] sm:$0xff]  ;;  %v67_v32 = vld [vmem:[#allocation2 + $0x78] sm:$0xff]  ;;  %s1414_s14 = scalar_lea.vmem %s1015_s13, 128  ;;  %p1419_p3 = scmp.lt.s32.totalorder %s1015_s13, %s1015_s13 }
  0x2e   :  { %1226 = vmatpush3.bf16.msra.mxu0 %v1225_v9  ;;  %1248 = vmatprep.subr.bf16.mxu1 %v1447_v1  ;;  %v1240_v30 = vpack.c.bf16 %v65_v29, %v64_v28  ;;  %v1243_v33 = vpack.c.bf16 %v67_v32, %v66_v31  ;;  %p1415_p2 = scmp.ne.s32.totalorder %s1015_s13, %s1414_s14  ;;  %p1420_p4 = scmp.lt.s32.totalorder %s1414_s14, %s1414_s14 }
  0x2f   :  { %1227 = vmatprep.subr.bf16.mxu0 %v1447_v1 }
  0x30   :  { %p1421_p5 = por %p1420_p4, %p1419_p3 }
  0x31   :  { %1250 = vmatpush3.bf16.msra.mxu1 %v1511_v18 }
  0x32   :  { %1229 = vmatpush3.bf16.msra.mxu0 %v1228_v17  ;;  %1251 = vmatprep.subr.bf16.mxu1 %v1447_v1  ;;  %p1422_p6 = pnand %p1421_p5, %p1415_p2 }
  0x33   :  { %1230 = vmatprep.subr.bf16.mxu0 %v1447_v1 }
  0x34   :  { %1142 = vmatmul.mubr.f32.vlgmr.msra.gmra.mrb[0].mxu1 %v1449_v2 }
  0x35   :  { %1253 = vmatpush3.bf16.msra.mxu1 %v1508_v14  ;;  %1152 = vmatprep.mubr.msk.f32.mxu1 %vm1448_vm0, %v1449_v2 }
  0x36   :  { %1232 = vmatpush3.bf16.msra.mxu0 %v1231_v21  ;;  %1254 = vmatprep.subr.bf16.mxu1 %v1447_v1 }
  0x37   :  { %1233 = vmatprep.subr.bf16.mxu0 %v1447_v1 }
  0x39   :  { %1256 = vmatpush3.bf16.msra.mxu1 %v1511_v18 }
  0x3a   :  { %1235 = vmatpush3.bf16.msra.mxu0 %v1234_v24  ;;  %1257 = vmatprep.subr.bf16.mxu1 %v1447_v1 }
  0x3b   :  { %1236 = vmatprep.subr.bf16.mxu0 %v1447_v1 }
  0x3e   :  { %1238 = vmatpush3.bf16.msra.mxu0 %v1237_v27 }
  0x3f   :  { %1239 = vmatprep.subr.bf16.mxu0 %v1447_v1 }
  0x42   :  { %1241 = vmatpush3.bf16.msra.mxu0 %v1240_v30 }
  0x43   :  { %1242 = vmatprep.subr.bf16.mxu0 %v1447_v1 }
  0x46   :  { %1244 = vmatpush3.bf16.msra.mxu0 %v1243_v33 }
  0x47   :  { %1269 = vmatprep.subr.bf16.mxu0 %v1447_v1 }
  0xa8   :  { %v48_v36 = vpop.permute.xlu0 %47 }
  0xa9   :  { %vm49_vm1 = vcmp.eq.s32.totalorder %v45_v35, %v48_v36 }
  0xaa   :  { %1131 = vmatmul.mubr.msk.f32.vlgmr.msra.gmra.mrb[0].mxu0 %vm49_vm1, %v1450_v37 }
  0xab   :  { %1271 = vmatpush3.bf16.msra.mxu0 %v1508_v14  ;;  %1185 = vmatprep.mubr.msk.f32.mxu0 %vm1448_vm0, %v1449_v2 }
  0xac   :  { %1272 = vmatprep.subr.bf16.mxu0 %v1447_v1 }
  0xaf   :  { %1274 = vmatpush3.bf16.msra.mxu0 %v1511_v18 }
  0xb0   :  { %1281 = vmatprep.subr.bf16.mxu0 %v1447_v1 }
 0x107   :  { %v212_v38 = vpop.f32.mrb[0].mxu1 }
 0x108   :  { %v1143_v39 = vpop.f32.mrb[1].mxu1 }
 0x17d   :  { %v1536_v40 = vpop.f32.mrb[0].mxu0 }
 0x17e   :  { %v216_v41 = vadd.f32 %v212_v38, %v1536_v40  ;;  %v1132_v42 = vpop.f32.mrb[1].mxu0 }
 0x180   :  { %1306 = vtanh.f32 %v216_v41  ;;  %v1026_v44 = vmul.f32 -1.442695, %v216_v41 }
 0x182   :  { %1308 = vpow2.f32 %v1026_v44 }
 0x18a   :  { %v1307_v43 = vpop.eup %1306 }
 0x18b   :  { %226 = vrot.lane.b32.xlu0 %v1307_v43, %s1451_s0 }
 0x18c   :  { %v1309_v45 = vpop.eup %1308 }
 0x18d   :  { %v220_v46 = vadd.f32 1.0, %v1309_v45 }
 0x18f   :  { %1310 = vrcp.f32 %v220_v46 }
 0x199   :  { %v1311_v47 = vpop.eup %1310 }
 0x19a   :  { %v224_v50 = vmul.f32 0.0, %v1311_v47 }
 0x1fd   :  { %v227_v48 = vpop.permute.xlu0 %226 }
 0x1fe   :  { %v229_v49 = vmul.f32 %v1311_v47, %v227_v48 }
 0x200   :  { %231 = vrot.lane.b32.xlu1 %v229_v49, %s1452_s11 }
 0x272   :  { %v232_v51 = vpop.permute.xlu1 %231 }
 0x273   :  { %v234_v52 = vadd.f32 %v232_v51, %v224_v50 }
 0x275   :  { %1312 = vtanh.f32 %v234_v52  ;;  %v328_v6 = vrot.slane %v234_v52, 7 }
 0x27f   :  { %v1313_v53 = vpop.eup %1312 }
 0x280   :  { %237 = vrot.lane.b32.xlu1 %v1313_v53, %s1451_s0 }
 0x2f2   :  { %v238_v54 = vpop.permute.xlu1 %237 }
 0x2f3   :  { %v1542_v55 = vmul.f32 %v1311_v47, %v238_v54 }
 0x2f5   :  { %242 = vrot.lane.b32.xlu0 %v1542_v55, %s1452_s11 }
 0x367   :  { %v243_v56 = vpop.permute.xlu0 %242 }
 0x368   :  { %1153 = vmatmul.mubr.msk.f32.vlgmr.msra.gmra.mrb[2].mxu1 %vm142_vm2, %v243_v56 }
 0x369   :  { %1259 = vmatpush3.bf16.msra.mxu1 %v1508_v14  ;;  %1163 = vmatprep.mubr.msk.f32.mxu1 %vm1448_vm0, %v1449_v2 }
 0x36a   :  { %1260 = vmatprep.subr.bf16.mxu1 %v1447_v1 }
 0x36d   :  { %1262 = vmatpush3.bf16.msra.mxu1 %v1511_v18 }
 0x36e   :  { %1263 = vmatprep.subr.bf16.mxu1 %v1447_v1 }
 0x43b   :  { %v312_v57 = vpop.f32.mrb[2].mxu1 }
 0x43c   :  { %v317_v58 = vrot.slane %v312_v57, 7  ;;  %v1154_v59 = vpop.f32.mrb[3].mxu1 }
 0x43e   :  { %v319_v60 = vadd.f32 %v317_v58, %v1536_v40 }
 0x440   :  { %1314 = vtanh.f32 %v319_v60  ;;  %v1028_v62 = vmul.f32 -1.442695, %v319_v60 }
 0x442   :  { %1316 = vpow2.f32 %v1028_v62 }
 0x44a   :  { %v1315_v61 = vpop.eup %1314 }
 0x44b   :  { %332 = vrot.lane.b32.xlu1 %v1315_v61, %s1451_s0 }
 0x44c   :  { %v1317_v63 = vpop.eup %1316 }
 0x44d   :  { %v323_v0 = vadd.f32 1.0, %v1317_v63 }
 0x44f   :  { %1318 = vrcp.f32 %v323_v0 }
 0x459   :  { %v1319_v3 = vpop.eup %1318 }
 0x45a   :  { %v330_v7 = vmul.f32 %v1319_v3, %v328_v6 }
 0x4bd   :  { %v333_v4 = vpop.permute.xlu1 %332 }
 0x4be   :  { %v335_v5 = vmul.f32 %v1319_v3, %v333_v4 }
 0x4c0   :  { %337 = vrot.lane.b32.xlu0 %v335_v5, %s1452_s11 }
 0x532   :  { %v338_v8 = vpop.permute.xlu0 %337 }
 0x533   :  { %v340_v9 = vadd.f32 %v338_v8, %v330_v7 }
 0x535   :  { %1320 = vtanh.f32 %v340_v9  ;;  %v435_v28 = vrot.slane %v340_v9, 7 }
 0x53f   :  { %v1321_v10 = vpop.eup %1320 }
 0x540   :  { %343 = vrot.lane.b32.xlu1 %v1321_v10, %s1451_s0 }
 0x5b2   :  { %v344_v11 = vpop.permute.xlu1 %343 }
 0x5b3   :  { %v346_v12 = vmul.f32 %v1319_v3, %v344_v11 }
 0x5b5   :  { %v348_v13 = vrot.slane %v346_v12, 1  ;;  %v990_v35 = vsel %vm989_vm3, %v1542_v55, %v346_v12 }
 0x5b7   :  { %349 = vrot.lane.b32.xlu0 %v348_v13, %s1452_s11 }
 0x629   :  { %v350_v15 = vpop.permute.xlu0 %349 }
 0x62a   :  { %1164 = vmatmul.mubr.msk.f32.vlgmr.msra.gmra.mrb[4].mxu1 %vm142_vm2, %v350_v15 }
 0x62b   :  { %1265 = vmatpush3.bf16.msra.mxu1 %v1508_v14  ;;  %1174 = vmatprep.mubr.msk.f32.mxu1 %vm1448_vm0, %v1449_v2 }
 0x62c   :  { %1266 = vmatprep.subr.bf16.mxu1 %v1447_v1 }
 0x62f   :  { %1268 = vmatpush3.bf16.msra.mxu1 %v1511_v18 }
 0x630   :  { %1275 = vmatprep.subr.bf16.mxu1 %v1447_v1 }
 0x6fd   :  { %v419_v16 = vpop.f32.mrb[4].mxu1 }
 0x6fe   :  { %v424_v17 = vrot.slane %v419_v16, 6  ;;  %v1165_v19 = vpop.f32.mrb[5].mxu1 }
 0x700   :  { %v426_v20 = vadd.f32 %v424_v17, %v1536_v40 }
 0x702   :  { %1322 = vtanh.f32 %v426_v20  ;;  %v1030_v22 = vmul.f32 -1.442695, %v426_v20 }
 0x704   :  { %1324 = vpow2.f32 %v1030_v22 }
 0x70c   :  { %v1323_v21 = vpop.eup %1322 }
 0x70d   :  { %439 = vrot.lane.b32.xlu1 %v1323_v21, %s1451_s0 }
 0x70e   :  { %v1325_v23 = vpop.eup %1324 }
 0x70f   :  { %v430_v24 = vadd.f32 1.0, %v1325_v23 }
 0x711   :  { %1326 = vrcp.f32 %v430_v24 }
 0x71b   :  { %v1327_v25 = vpop.eup %1326 }
 0x71c   :  { %v437_v29 = vmul.f32 %v1327_v25, %v435_v28 }
 0x77f   :  { %v440_v26 = vpop.permute.xlu1 %439 }
 0x780   :  { %v442_v27 = vmul.f32 %v1327_v25, %v440_v26 }
 0x782   :  { %444 = vrot.lane.b32.xlu0 %v442_v27, %s1452_s11 }
 0x7f4   :  { %v445_v30 = vpop.permute.xlu0 %444 }
 0x7f5   :  { %v447_v31 = vadd.f32 %v445_v30, %v437_v29 }
 0x7f7   :  { %1328 = vtanh.f32 %v447_v31  ;;  %v542_v51 = vrot.slane %v447_v31, 7 }
 0x801   :  { %v1329_v32 = vpop.eup %1328 }
 0x802   :  { %450 = vrot.lane.b32.xlu1 %v1329_v32, %s1451_s0 }
 0x874   :  { %v451_v33 = vpop.permute.xlu1 %450 }
 0x875   :  { %v453_v34 = vmul.f32 %v1327_v25, %v451_v33 }
 0x877   :  { %v455_v36 = vrot.slane %v453_v34, 2  ;;  %v992_v37 = vsel %vm991_vm4, %v990_v35, %v453_v34 }
 0x879   :  { %456 = vrot.lane.b32.xlu0 %v455_v36, %s1452_s11 }
 0x8eb   :  { %v457_v38 = vpop.permute.xlu0 %456 }
 0x8ec   :  { %1175 = vmatmul.mubr.msk.f32.vlgmr.msra.gmra.mrb[6].mxu1 %vm142_vm2, %v457_v38 }
 0x8ed   :  { %1277 = vmatpush3.bf16.msra.mxu1 %v1508_v14  ;;  %1196 = vmatprep.mubr.msk.f32.mxu1 %vm1448_vm0, %v1449_v2 }
 0x8ee   :  { %1278 = vmatprep.subr.bf16.mxu1 %v1447_v1 }
 0x8f1   :  { %1280 = vmatpush3.bf16.msra.mxu1 %v1511_v18 }
 0x8f2   :  { %1287 = vmatprep.subr.bf16.mxu1 %v1447_v1 }
 0x9bf   :  { %v526_v39 = vpop.f32.mrb[6].mxu1 }
 0x9c0   :  { %v531_v41 = vrot.slane %v526_v39, 5  ;;  %v1176_v42 = vpop.f32.mrb[7].mxu1 }
 0x9c2   :  { %v533_v43 = vadd.f32 %v531_v41, %v1536_v40 }
 0x9c4   :  { %1330 = vtanh.f32 %v533_v43  ;;  %v1032_v45 = vmul.f32 -1.442695, %v533_v43 }
 0x9c6   :  { %1332 = vpow2.f32 %v1032_v45 }
 0x9ce   :  { %v1331_v44 = vpop.eup %1330 }
 0x9cf   :  { %546 = vrot.lane.b32.xlu1 %v1331_v44, %s1451_s0 }
 0x9d0   :  { %v1333_v46 = vpop.eup %1332 }
 0x9d1   :  { %v537_v47 = vadd.f32 1.0, %v1333_v46 }
 0x9d3   :  { %1334 = vrcp.f32 %v537_v47 }
 0x9dd   :  { %v1335_v48 = vpop.eup %1334 }
 0x9de   :  { %v544_v52 = vmul.f32 %v1335_v48, %v542_v51 }
 0xa41   :  { %v547_v49 = vpop.permute.xlu1 %546 }
 0xa42   :  { %v549_v50 = vmul.f32 %v1335_v48, %v547_v49 }
 0xa44   :  { %551 = vrot.lane.b32.xlu0 %v549_v50, %s1452_s11 }
 0xab6   :  { %v552_v53 = vpop.permute.xlu0 %551 }
 0xab7   :  { %v554_v54 = vadd.f32 %v552_v53, %v544_v52 }
 0xab9   :  { %1336 = vtanh.f32 %v554_v54  ;;  %v649_v10 = vrot.slane %v554_v54, 7 }
 0xac3   :  { %v1337_v55 = vpop.eup %1336 }
 0xac4   :  { %557 = vrot.lane.b32.xlu1 %v1337_v55, %s1451_s0 }
 0xb36   :  { %v558_v56 = vpop.permute.xlu1 %557 }
 0xb37   :  { %v560_v57 = vmul.f32 %v1335_v48, %v558_v56 }
 0xb39   :  { %v562_v58 = vrot.slane %v560_v57, 3  ;;  %v994_v59 = vsel %vm993_vm5, %v992_v37, %v560_v57 }
 0xb3b   :  { %563 = vrot.lane.b32.xlu0 %v562_v58, %s1452_s11 }
 0xbad   :  { %v564_v60 = vpop.permute.xlu0 %563 }
 0xbae   :  { %1186 = vmatmul.mubr.msk.f32.vlgmr.msra.gmra.mrb[2].mxu0 %vm142_vm2, %v564_v60 }
 0xbaf   :  { %1283 = vmatpush3.bf16.msra.mxu0 %v1508_v14  ;;  %1207 = vmatprep.mubr.msk.f32.mxu0 %vm1448_vm0, %v1449_v2 }
 0xbb0   :  { %1284 = vmatprep.subr.bf16.mxu0 %v1447_v1 }
 0xbb3   :  { %1286 = vmatpush3.bf16.msra.mxu0 %v1511_v18 }
 0xc81   :  { %v633_v61 = vpop.f32.mrb[2].mxu0 }
 0xc82   :  { %v638_v62 = vrot.slane %v633_v61, 4  ;;  %v1187_v63 = vpop.f32.mrb[3].mxu0 }
 0xc84   :  { %v640_v0 = vadd.f32 %v638_v62, %v1536_v40 }
 0xc86   :  { %1338 = vtanh.f32 %v640_v0  ;;  %v1034_v4 = vmul.f32 -1.442695, %v640_v0 }
 0xc88   :  { %1340 = vpow2.f32 %v1034_v4 }
 0xc90   :  { %v1339_v3 = vpop.eup %1338 }
 0xc91   :  { %653 = vrot.lane.b32.xlu1 %v1339_v3, %s1451_s0 }
 0xc92   :  { %v1341_v5 = vpop.eup %1340 }
 0xc93   :  { %v644_v6 = vadd.f32 1.0, %v1341_v5 }
 0xc95   :  { %1342 = vrcp.f32 %v644_v6 }
 0xc9f   :  { %v1343_v7 = vpop.eup %1342 }
 0xca0   :  { %v651_v11 = vmul.f32 %v1343_v7, %v649_v10 }
 0xd03   :  { %v654_v8 = vpop.permute.xlu1 %653 }
 0xd04   :  { %v656_v9 = vmul.f32 %v1343_v7, %v654_v8 }
 0xd06   :  { %658 = vrot.lane.b32.xlu0 %v656_v9, %s1452_s11 }
 0xd78   :  { %v659_v12 = vpop.permute.xlu0 %658 }
 0xd79   :  { %v661_v13 = vadd.f32 %v659_v12, %v651_v11 }
 0xd7b   :  { %1344 = vtanh.f32 %v661_v13 }
 0xd85   :  { %v1345_v15 = vpop.eup %1344 }
 0xd86   :  { %664 = vrot.lane.b32.xlu1 %v1345_v15, %s1451_s0 }
 0xdf8   :  { %v665_v16 = vpop.permute.xlu1 %664 }
 0xdf9   :  { %v667_v17 = vmul.f32 %v1343_v7, %v665_v16 }
 0xdfb   :  { %v669_v19 = vrot.slane %v667_v17, 4  ;;  %v996_v20 = vsel %vm995_vm6, %v994_v59, %v667_v17 }
 0xdfd   :  { %670 = vrot.lane.b32.xlu0 %v669_v19, %s1452_s11 }
 0xe6f   :  { %v671_v21 = vpop.permute.xlu0 %670 }
 0xe70   :  { %1197 = vmatmul.mubr.msk.f32.vlgmr.msra.gmra.mrb[8].mxu1 %vm142_vm2, %v671_v21 }
 0xe71   :  { %1289 = vmatpush3.bf16.msra.mxu1 %v1508_v14  ;;  %1218 = vmatprep.mubr.msk.f32.mxu1 %vm1448_vm0, %v1449_v2 }
 0xe72   :  { %1290 = vmatprep.subr.bf16.mxu1 %v1447_v1  ;;  %v756_v1 = vrot.slane %v661_v13, 7 }
 0xe75   :  { %1292 = vmatpush3.bf16.msra.mxu1 %v1511_v18 }
 0xf43   :  { %v740_v22 = vpop.f32.mrb[8].mxu1 }
 0xf44   :  { %v745_v23 = vrot.slane %v740_v22, 3  ;;  %v1198_v24 = vpop.f32.mrb[9].mxu1 }
 0xf46   :  { %v747_v25 = vadd.f32 %v745_v23, %v1536_v40 }
 0xf48   :  { %1346 = vtanh.f32 %v747_v25  ;;  %v1036_v27 = vmul.f32 -1.442695, %v747_v25 }
 0xf4a   :  { %1348 = vpow2.f32 %v1036_v27 }
 0xf52   :  { %v1347_v26 = vpop.eup %1346 }
 0xf53   :  { %760 = vrot.lane.b32.xlu1 %v1347_v26, %s1451_s0 }
 0xf54   :  { %v1349_v28 = vpop.eup %1348 }
 0xf55   :  { %v751_v14 = vadd.f32 1.0, %v1349_v28 }
 0xf57   :  { %1350 = vrcp.f32 %v751_v14 }
 0xf61   :  { %v1351_v29 = vpop.eup %1350 }
 0xf62   :  { %v758_v18 = vmul.f32 %v1351_v29, %v756_v1 }
 0xfc5   :  { %v761_v2 = vpop.permute.xlu1 %760 }
 0xfc6   :  { %v763_v30 = vmul.f32 %v1351_v29, %v761_v2 }
 0xfc8   :  { %765 = vrot.lane.b32.xlu0 %v763_v30, %s1452_s11 }
0x103a   :  { %v766_v31 = vpop.permute.xlu0 %765 }
0x103b   :  { %v768_v32 = vadd.f32 %v766_v31, %v758_v18 }
0x103d   :  { %1352 = vtanh.f32 %v768_v32  ;;  %v863_v51 = vrot.slane %v768_v32, 7 }
0x1047   :  { %v1353_v33 = vpop.eup %1352 }
0x1048   :  { %771 = vrot.lane.b32.xlu1 %v1353_v33, %s1451_s0 }
0x10ba   :  { %v772_v34 = vpop.permute.xlu1 %771 }
0x10bb   :  { %v774_v35 = vmul.f32 %v1351_v29, %v772_v34 }
0x10bd   :  { %v776_v36 = vrot.slane %v774_v35, 5  ;;  %v998_v37 = vsel %vm997_vm7, %v996_v20, %v774_v35 }
0x10bf   :  { %777 = vrot.lane.b32.xlu0 %v776_v36, %s1452_s11 }
0x1131   :  { %v778_v38 = vpop.permute.xlu0 %777 }
0x1132   :  { %1208 = vmatmul.mubr.msk.f32.vlgmr.msra.gmra.mrb[4].mxu0 %vm142_vm2, %v778_v38 }
0x1205   :  { %v847_v39 = vpop.f32.mrb[4].mxu0 }
0x1206   :  { %v852_v41 = vrot.slane %v847_v39, 2  ;;  %v1209_v42 = vpop.f32.mrb[5].mxu0 }
0x1208   :  { %v854_v43 = vadd.f32 %v852_v41, %v1536_v40 }
0x120a   :  { %1354 = vtanh.f32 %v854_v43  ;;  %v1038_v45 = vmul.f32 -1.442695, %v854_v43 }
0x120c   :  { %1356 = vpow2.f32 %v1038_v45 }
0x1214   :  { %v1355_v44 = vpop.eup %1354 }
0x1215   :  { %867 = vrot.lane.b32.xlu1 %v1355_v44, %s1451_s0 }
0x1216   :  { %v1357_v46 = vpop.eup %1356 }
0x1217   :  { %v858_v47 = vadd.f32 1.0, %v1357_v46 }
0x1219   :  { %1358 = vrcp.f32 %v858_v47 }
0x1223   :  { %v1359_v48 = vpop.eup %1358 }
0x1224   :  { %v865_v52 = vmul.f32 %v1359_v48, %v863_v51 }
0x1287   :  { %v868_v49 = vpop.permute.xlu1 %867 }
0x1288   :  { %v870_v50 = vmul.f32 %v1359_v48, %v868_v49 }
0x128a   :  { %872 = vrot.lane.b32.xlu0 %v870_v50, %s1452_s11 }
0x12fc   :  { %v873_v53 = vpop.permute.xlu0 %872 }
0x12fd   :  { %v875_v54 = vadd.f32 %v873_v53, %v865_v52 }
0x12ff   :  { %1360 = vtanh.f32 %v875_v54  ;;  %v970_v10 = vrot.slane %v875_v54, 7 }
0x1309   :  { %v1361_v55 = vpop.eup %1360 }
0x130a   :  { %878 = vrot.lane.b32.xlu1 %v1361_v55, %s1451_s0 }
0x137c   :  { %v879_v56 = vpop.permute.xlu1 %878 }
0x137d   :  { %v881_v57 = vmul.f32 %v1359_v48, %v879_v56 }
0x137f   :  { %v883_v58 = vrot.slane %v881_v57, 6  ;;  %v1000_v59 = vsel %vm999_vm8, %v998_v37, %v881_v57 }
0x1381   :  { %884 = vrot.lane.b32.xlu0 %v883_v58, %s1452_s11 }
0x13f3   :  { %v885_v60 = vpop.permute.xlu0 %884 }
0x13f4   :  { %1219 = vmatmul.mubr.msk.f32.vlgmr.msra.gmra.mrb[10].mxu1 %vm142_vm2, %v885_v60 }
0x14c7   :  { %v954_v61 = vpop.f32.mrb[10].mxu1 }
0x14c8   :  { %v959_v62 = vrot.slane %v954_v61, 1  ;;  %v1220_v63 = vpop.f32.mrb[11].mxu1 }
0x14ca   :  { %v961_v0 = vadd.f32 %v959_v62, %v1536_v40 }
0x14cc   :  { %1362 = vtanh.f32 %v961_v0  ;;  %v1040_v4 = vmul.f32 -1.442695, %v961_v0 }
0x14ce   :  { %1364 = vpow2.f32 %v1040_v4 }
0x14d6   :  { %v1363_v3 = vpop.eup %1362 }
0x14d7   :  { %974 = vrot.lane.b32.xlu1 %v1363_v3, %s1451_s0 }
0x14d8   :  { %v1365_v5 = vpop.eup %1364 }
0x14d9   :  { %v965_v6 = vadd.f32 1.0, %v1365_v5 }
0x14db   :  { %1366 = vrcp.f32 %v965_v6 }
0x14e5   :  { %v1367_v7 = vpop.eup %1366 }
0x14e6   :  { %v972_v11 = vmul.f32 %v1367_v7, %v970_v10 }
0x1549   :  { %v975_v8 = vpop.permute.xlu1 %974 }
0x154a   :  { %v977_v9 = vmul.f32 %v1367_v7, %v975_v8 }
0x154c   :  { %979 = vrot.lane.b32.xlu0 %v977_v9, %s1452_s11 }
0x15be   :  { %v980_v12 = vpop.permute.xlu0 %979 }
0x15bf   :  { %v982_v13 = vadd.f32 %v980_v12, %v972_v11 }
0x15c1   :  { %1368 = vtanh.f32 %v982_v13 }
0x15cb   :  { %v1369_v40 = vpop.eup %1368 }
0x15cc   :  { %985 = vrot.lane.b32.xlu1 %v1369_v40, %s1451_s0 }
0x163e   :  { %v986_v15 = vpop.permute.xlu1 %985 }
0x163f   :  { %v988_v16 = vmul.f32 %v1367_v7, %v986_v15 }
0x1641   :  { %v1002_v17 = vsel %vm1001_vm9, %v1000_v59, %v988_v16 }
0x1642   :  { %1004 = vrot.lane.b32.xlu0 %v1002_v17, %s1452_s11 }
0x16b4   :  { %v1005_v19 = vpop.permute.xlu0 %1004 }
0x16b5   :  { %1007 = vst.msk [vmem:[#allocation7] sm:$0xff] %vm142_vm2, %v1005_v19 }
0x16b6   :  { %1425 = shalt.err (!%p1422_p6)
}
0x16b7   :  { %s1426_s17 = scalar_lea.hbm %s1633_s3, 128 }
0x16b8   :  { %p1427_p7 = scmp.ne.s32.totalorder %s1633_s3, %s1426_s17  ;;  %p1430_p8 = scmp.lt.u32.totalorder %s1426_s17, %s1633_s3 }
0x16ba   :  { %p1432_p9 = pnand %p1430_p8, %p1427_p7 }
0x16bc   :  { %1435 = shalt.err (!%p1432_p9)
}
0x16bd   :  { %1017 = dma.vmem_to_hbm [thread:$0]  %s1015_s13, 128, %s1633_s3, [#allocation4]  }
0x16be   :  { %1440 = dma.done.wait [#allocation4], 128  }
0x16bf   :  { %1441 = vsyncadd [#allocation4], 4294967168 }
0x16c0   :  { %1021 = vsyncpa [#allocation3], 1 }
0x16c1   :  { %1022 = vsyncpa [#allocation6], 1 }
0x16c2   :  { %1023 = vsyncpa [#allocation4], 1 }

</bundles_post_ra>
